<compile_context>
chip_gen: v7x
topology: tpu7x:2x2x1
jax: 0.10.0
libtpu: 0.0.40
codegen_flags: <defaults>
</compile_context>

<pallas_src>
import functools

import jax
import jax.numpy as jnp
from jax import lax
from jax.experimental import pallas as pl
from jax.experimental.pallas import tpu as pltpu


# ----------------------------------------------------------------------------
# Kernel: grid = (group g, phase p in {0,1}, spatial tile t)
# ----------------------------------------------------------------------------
def _fusion_kernel(glen_ref,     # SMEM (G,) int32           (scalar prefetch)
                   x_ref,        # (1, B_max*C, HW_t)         packed group tile
                   mtile_ref,    # (B_max*C, B_max*C)         tile(Wq @ Wk^T)
                   e_ref,        # (B_max*C, B_max)           agent indicator
                   et_ref,       # (B_max, B_max*C)           its transpose
                   wvo_ref,      # (C, C)                     (Wv @ Wout)^T
                   bias_ref,     # (C, 1)                     to_out bias
                   y_ref,        # (1, C, HW_t)               ego output tile
                   att_ref,      # (1, B_max, B_max)          attention map
                   gacc_ref,     # VMEM scratch (B_max*C, B_max*C) f32
                   att_sc,       # VMEM scratch (B_max, B_max) f32
                   *, b_max, c_dim, scale):
    g = pl.program_id(0)
    phase = pl.program_id(1)
    t = pl.program_id(2)

    xf = x_ref[0].astype(jnp.float32)                  # (B_max*C, HW_t)

    # ---------------- phase 0: accumulate Gram matrix over spatial tiles ----
    @pl.when(jnp.logical_and(phase == 0, t == 0))
    def _init():
        gacc_ref[...] = jnp.zeros_like(gacc_ref)

    @pl.when(phase == 0)
    def _accumulate():
        # (B_max*C, HW_t) @ (HW_t, B_max*C) on the MXU, contraction over lanes.
        gacc_ref[...] += lax.dot_general(
            xf, xf, (((1,), (1,)), ((), ())),
            preferred_element_type=jnp.float32)

    # ---------------- phase 1 / first tile: fold -> scores -> softmax -------
    @pl.when(jnp.logical_and(phase == 1, t == 0))
    def _softmax():
        gm = gacc_ref[...] * mtile_ref[...]             # Hadamard with tile(M)
        ge = jnp.dot(gm, e_ref[...], preferred_element_type=jnp.float32)
        scores = jnp.dot(et_ref[...], ge, preferred_element_type=jnp.float32)
        scores = scores * scale                         # (B_max, B_max)
        # mask padded agents of this group (columns j >= record_len[g])
        col = lax.broadcasted_iota(jnp.int32, (b_max, b_max), 1)
        glen = glen_ref[g]
        scores = jnp.where(col < glen, scores, -1e30)
        m = jnp.max(scores, axis=-1, keepdims=True)
        e = jnp.exp(scores - m)
        denom = jnp.sum(e, axis=-1, keepdims=True)
        att = e * pl.reciprocal(denom, approx=True)     # EUP, off the VALU
        att_sc[...] = att
        att_ref[0] = att.astype(att_ref.dtype)

    # ---------------- phase 1: ego weighted sum + fused output projection ---
    @pl.when(phase == 1)
    def _output():
        att = att_sc[...]                               # (B_max, B_max)
        xbar = jnp.zeros((c_dim, xf.shape[1]), jnp.float32)
        for b in range(b_max):                          # B_max is small+static
            w_b = att[0:1, b:b + 1]                     # (1,1) ego weight
            xbar = xbar + w_b * xf[b * c_dim:(b + 1) * c_dim, :]
        # y = (Wv @ Wout)^T @ xbar + b   ==  to_out(att[0] @ v) in NCHW layout
        y = jnp.dot(wvo_ref[...], xbar, preferred_element_type=jnp.float32)
        y = y + bias_ref[...]
        y_ref[0] = y.astype(y_ref.dtype)


# ----------------------------------------------------------------------------
# Wrapper
# ----------------------------------------------------------------------------
def agent_wise_fusion_forward(x_nchw, record_len, w_qkv, w_out, b_out, scale,
                              hw_tile=128):
    """Forward of AgentWiseFusion.

    x_nchw: (N, C, H, W), N == sum(record_len); record_len: static python list.
    w_qkv: (C, 3*I) (x @ w convention); w_out: (I, C); b_out: (C,).
    Returns ((num_groups, C, H, W), att_map of the last group).
    """
    N, C, H, W = x_nchw.shape
    HW = H * W
    G = len(record_len)
    b_max = max(record_len)
    BC = b_max * C
    I = w_qkv.shape[1] // 3

    # ---- fold the tiny weights once (exact, just reassociated linear maps) -
    wq = w_qkv[:, :I]
    wk = w_qkv[:, I:2 * I]
    wv = w_qkv[:, 2 * I:]
    m_qk = wq @ wk.T                                    # (C, C)
    mtile = jnp.tile(m_qk, (b_max, b_max))              # (B_max*C, B_max*C)
    wvo_t = (wv @ w_out).T                              # (C, C)
    bias = b_out.reshape(C, 1)
    rows = jnp.arange(BC)[:, None] // C
    cols = jnp.arange(b_max)[None, :]
    e_mat = (rows == cols).astype(jnp.float32)          # (B_max*C, B_max)
    et_mat = e_mat.T                                    # (B_max, B_max*C)

    # ---- pack ragged groups, channels-first, zero-padded to B_max ----------
    groups = []
    start = 0
    for B in record_len:
        xg = x_nchw[start:start + B].reshape(B * C, HW)   # free reshape (NCHW)
        start += B
        xg = jnp.pad(xg, ((0, (b_max - B) * C), (0, 0)))
        groups.append(xg)
    x_pack = jnp.stack(groups, axis=0)                  # (G, B_max*C, HW)
    glen = jnp.asarray(record_len, dtype=jnp.int32)

    if HW % hw_tile != 0:
        hw_tile = HW
    n_t = HW // hw_tile

    kernel = functools.partial(_fusion_kernel,
                               b_max=b_max, c_dim=C, scale=scale)

    grid_spec = pltpu.PrefetchScalarGridSpec(
        num_scalar_prefetch=1,
        grid=(G, 2, n_t),                               # group, phase, hw tile
        in_specs=[
            pl.BlockSpec((1, BC, hw_tile), lambda g, p, t, gl: (g, 0, t)),
            pl.BlockSpec((BC, BC), lambda g, p, t, gl: (0, 0)),
            pl.BlockSpec((BC, b_max), lambda g, p, t, gl: (0, 0)),
            pl.BlockSpec((b_max, BC), lambda g, p, t, gl: (0, 0)),
            pl.BlockSpec((C, C), lambda g, p, t, gl: (0, 0)),
            pl.BlockSpec((C, 1), lambda g, p, t, gl: (0, 0)),
        ],
        out_specs=(
            # Output tile index is frozen at 0 during phase 0 (never written
            # there) and walks the spatial tiles during phase 1.
            pl.BlockSpec((1, C, hw_tile), lambda g, p, t, gl: (g, 0, p * t)),
            pl.BlockSpec((1, b_max, b_max), lambda g, p, t, gl: (g, 0, 0)),
        ),
        scratch_shapes=[
            pltpu.VMEM((BC, BC), jnp.float32),          # Gram accumulator
            pltpu.VMEM((b_max, b_max), jnp.float32),    # attention weights
        ],
    )

    y_pack, att_pack = pl.pallas_call(
        kernel,
        grid_spec=grid_spec,
        out_shape=(
            jax.ShapeDtypeStruct((G, C, HW), jnp.float32),
            jax.ShapeDtypeStruct((G, b_max, b_max), jnp.float32),
        ),
        compiler_params=pltpu.CompilerParams(
            dimension_semantics=("parallel", "arbitrary", "arbitrary"),
            vmem_limit_bytes=32 * 1024 * 1024,
        ),
    )(glen, x_pack, mtile, e_mat, et_mat, wvo_t, bias)

    fused = y_pack.reshape(G, C, H, W)                  # already NCHW
    b_last = record_len[-1]
    att_map = att_pack[-1, :b_last, :b_last]
    return fused, att_map


# ----------------------------------------------------------------------------
# Pure-JAX reference (literal port of the PyTorch forward) for the check.
# ----------------------------------------------------------------------------
def _reference_forward(x_nchw, record_len, w_qkv, w_out, b_out, scale):
    I = w_qkv.shape[1] // 3
    outs, att = [], None
    start = 0
    for B in record_len:
        xx = x_nchw[start:start + B]
        start += B
        xx = jnp.transpose(xx, (0, 2, 3, 1))            # b c h w -> b h w c
        Bn, H, W, _ = xx.shape
        qkv = xx @ w_qkv
        q, k, v = qkv[..., :I], qkv[..., I:2 * I], qkv[..., 2 * I:]
        qf, kf, vf = (t.reshape(Bn, -1) for t in (q, k, v))
        scores = (qf @ kf.T) * scale
        att = jax.nn.softmax(scores, axis=-1)
        o = (att @ vf).reshape(Bn, H, W, I)
        o = o @ w_out + b_out                           # to_out (dropout = id)
        o = o[0:1]                                      # ego agent
        outs.append(jnp.transpose(o, (0, 3, 1, 2)))     # (1, C, H, W)
    return jnp.concatenate(outs, 0), att


if __name__ == "__main__":
    # Module hyper-params (inner_dim == heads*dim_head must equal dim, as the
    # reference rearrange implicitly assumes).
    dim = 4                      # C
    heads = 2
    dim_head = 2
    inner_dim = heads * dim_head  # == dim
    scale = dim_head ** (-0.5)
    H = W = 16
    record_len = [2, 3]          # static group sizes
    N = sum(record_len)

    key = jax.random.PRNGKey(0)
    kx, kq, kw, kb = jax.random.split(key, 4)

    # Deterministic synthetic parameters (pre-transposed to the x @ w form).
    w_qkv = jax.random.normal(kq, (dim, inner_dim * 3), jnp.float32) * 0.2
    w_out = jax.random.normal(kw, (inner_dim, dim), jnp.float32) * 0.2
    b_out = jax.random.normal(kb, (dim,), jnp.float32) * 0.1

    x = jax.random.normal(kx, (N, dim, H, W), jnp.float32)   # NCHW, like torch

    fused, att_map = agent_wise_fusion_forward(x, record_len,
                                               w_qkv, w_out, b_out, scale)
    fused = jax.block_until_ready(fused)
    att_map = jax.block_until_ready(att_map)

    ref_fused, ref_att = _reference_forward(x, record_len,
                                            w_qkv, w_out, b_out, scale)

    assert fused.shape == (len(record_len), dim, H, W), fused.shape
    assert att_map.shape == (record_len[-1], record_len[-1]), att_map.shape
    assert jnp.allclose(fused, ref_fused, atol=2e-3, rtol=2e-3)
    assert jnp.allclose(att_map, ref_att, atol=2e-3, rtol=2e-3)

    print("KERNEL_OK")
</pallas_src>

<mosaic_0001>
module attributes {stable_mosaic.version = 11 : i64} {
  func.func @_fusion_kernel(%arg0: i32, %arg1: i32, %arg2: i32, %arg3: memref<2xi32, #tpu.memory_space<smem>>, %arg4: memref<1x12x128xf32, #tpu.memory_space<vmem>>, %arg5: memref<12x12xf32, #tpu.memory_space<vmem>>, %arg6: memref<12x3xf32, #tpu.memory_space<vmem>>, %arg7: memref<3x12xf32, #tpu.memory_space<vmem>>, %arg8: memref<4x4xf32, #tpu.memory_space<vmem>>, %arg9: memref<4x1xf32, #tpu.memory_space<vmem>>, %arg10: memref<1x4x128xf32, #tpu.memory_space<vmem>>, %arg11: memref<1x3x3xf32, #tpu.memory_space<vmem>>, %arg12: memref<12x12xf32, #tpu.memory_space<vmem>>, %arg13: memref<3x3xf32, #tpu.memory_space<vmem>>) attributes {dimension_semantics = [#tpu.dimension_semantics<parallel>, #tpu.dimension_semantics<arbitrary>, #tpu.dimension_semantics<arbitrary>], iteration_bounds = array<i64: 2, 2, 2>, scalar_prefetch = 1 : i64, scratch_operands = 2 : i64, tpu.core_type = #tpu.core_type<tc>, window_params = [{transform_indices = @transform_0, window_bounds = array<i64: 1, 12, 128>}, {pipeline_mode = #tpu.pipeline_mode<synchronous>, transform_indices = @transform_1, window_bounds = array<i64: 12, 12>}, {pipeline_mode = #tpu.pipeline_mode<synchronous>, transform_indices = @transform_2, window_bounds = array<i64: 12, 3>}, {pipeline_mode = #tpu.pipeline_mode<synchronous>, transform_indices = @transform_3, window_bounds = array<i64: 3, 12>}, {pipeline_mode = #tpu.pipeline_mode<synchronous>, transform_indices = @transform_4, window_bounds = array<i64: 4, 4>}, {pipeline_mode = #tpu.pipeline_mode<synchronous>, transform_indices = @transform_5, window_bounds = array<i64: 4, 1>}, {transform_indices = @transform_6, window_bounds = array<i64: 1, 4, 128>}, {transform_indices = @transform_7, window_bounds = array<i64: 1, 3, 3>}]} {
    %c0 = arith.constant 0 : index
    %c0_0 = arith.constant 0 : index
    %c0_1 = arith.constant 0 : index
    %0 = vector.load %arg4[%c0, %c0_0, %c0_1] : memref<1x12x128xf32, #tpu.memory_space<vmem>>, vector<1x12x128xf32>
    %1 = vector.shape_cast %0 : vector<1x12x128xf32> to vector<12x128xf32>
    %c0_i32 = arith.constant 0 : i32
    %2 = arith.cmpi eq, %arg1, %c0_i32 : i32
    %c0_i32_2 = arith.constant 0 : i32
    %3 = arith.cmpi eq, %arg2, %c0_i32_2 : i32
    %4 = arith.andi %2, %3 : i1
    %5 = arith.extui %4 : i1 to i32
    %c0_i32_3 = arith.constant 0 : i32
    %6 = arith.cmpi ne, %5, %c0_i32_3 : i32
    scf.if %6 {
      %cst = arith.constant 0.000000e+00 : f32
      %18 = vector.broadcast %cst : f32 to vector<12x12xf32>
      %c0_10 = arith.constant 0 : index
      %c0_11 = arith.constant 0 : index
      %19 = vector.load %arg12[%c0_10, %c0_11] : memref<12x12xf32, #tpu.memory_space<vmem>>, vector<12x12xf32>
      tpu.vector_store %arg12[%c0_10, %c0_11], %18 {strides = array<i32>} : memref<12x12xf32, #tpu.memory_space<vmem>>, vector<12x12xf32>,
    } else {
    }
    %c0_i32_4 = arith.constant 0 : i32
    %7 = arith.cmpi eq, %arg1, %c0_i32_4 : i32
    %8 = arith.extui %7 : i1 to i32
    %c0_i32_5 = arith.constant 0 : i32
    %9 = arith.cmpi ne, %8, %c0_i32_5 : i32
    scf.if %9 {
      %c0_10 = arith.constant 0 : index
      %c0_11 = arith.constant 0 : index
      %18 = vector.load %arg12[%c0_10, %c0_11] : memref<12x12xf32, #tpu.memory_space<vmem>>, vector<12x12xf32>
      %cst = arith.constant dense<0.000000e+00> : vector<12x12xf32>
      %19 = tpu.matmul %1, %1, %cst {dimension_numbers = #tpu.dot_dimension_numbers<[1], [1], [0], [0], [0, 0, 1, 0], [], []>} : vector<12x128xf32>, vector<12x128xf32>, vector<12x12xf32> -> vector<12x12xf32>
      %20 = arith.addf %18, %19 : vector<12x12xf32>
      %c0_12 = arith.constant 0 : index
      %c0_13 = arith.constant 0 : index
      %21 = vector.load %arg12[%c0_12, %c0_13] : memref<12x12xf32, #tpu.memory_space<vmem>>, vector<12x12xf32>
      tpu.vector_store %arg12[%c0_12, %c0_13], %20 {strides = array<i32>} : memref<12x12xf32, #tpu.memory_space<vmem>>, vector<12x12xf32>,
    } else {
    }
    %c1_i32 = arith.constant 1 : i32
    %10 = arith.cmpi eq, %arg1, %c1_i32 : i32
    %c0_i32_6 = arith.constant 0 : i32
    %11 = arith.cmpi eq, %arg2, %c0_i32_6 : i32
    %12 = arith.andi %10, %11 : i1
    %13 = arith.extui %12 : i1 to i32
    %c0_i32_7 = arith.constant 0 : i32
    %14 = arith.cmpi ne, %13, %c0_i32_7 : i32
    scf.if %14 {
      %c0_10 = arith.constant 0 : index
      %c0_11 = arith.constant 0 : index
      %18 = vector.load %arg12[%c0_10, %c0_11] : memref<12x12xf32, #tpu.memory_space<vmem>>, vector<12x12xf32>
      %c0_12 = arith.constant 0 : index
      %c0_13 = arith.constant 0 : index
      %19 = vector.load %arg5[%c0_12, %c0_13] : memref<12x12xf32, #tpu.memory_space<vmem>>, vector<12x12xf32>
      %20 = arith.mulf %18, %19 : vector<12x12xf32>
      %c0_14 = arith.constant 0 : index
      %c0_15 = arith.constant 0 : index
      %21 = vector.load %arg6[%c0_14, %c0_15] : memref<12x3xf32, #tpu.memory_space<vmem>>, vector<12x3xf32>
      %cst = arith.constant dense<0.000000e+00> : vector<12x3xf32>
      %22 = tpu.matmul %20, %21, %cst {dimension_numbers = #tpu.dot_dimension_numbers<[1], [0], [0], [1], [0, 0, 1, 1], [], []>} : vector<12x12xf32>, vector<12x3xf32>, vector<12x3xf32> -> vector<12x3xf32>
      %c0_16 = arith.constant 0 : index
      %c0_17 = arith.constant 0 : index
      %23 = vector.load %arg7[%c0_16, %c0_17] : memref<3x12xf32, #tpu.memory_space<vmem>>, vector<3x12xf32>
      %cst_18 = arith.constant dense<0.000000e+00> : vector<3x3xf32>
      %24 = tpu.matmul %23, %22, %cst_18 {dimension_numbers = #tpu.dot_dimension_numbers<[1], [0], [0], [1], [0, 0, 1, 1], [], []>} : vector<3x12xf32>, vector<12x3xf32>, vector<3x3xf32> -> vector<3x3xf32>
      %cst_19 = arith.constant 0.707106769 : f32
      %25 = vector.broadcast %cst_19 : f32 to vector<3x3xf32>
      %26 = arith.mulf %24, %25 : vector<3x3xf32>
      %27 = tpu.iota {dimensions = array<i32: 1>} : vector<3x3xi32>
      %28 = arith.index_cast %arg0 : i32 to index
      %29 = memref.load %arg3[%28] : memref<2xi32, #tpu.memory_space<smem>>
      %30 = vector.broadcast %29 : i32 to vector<3x3xi32>
      %31 = arith.cmpi slt, %27, %30 : vector<3x3xi32>
      %cst_20 = arith.constant -1.000000e+30 : f32
      %32 = vector.broadcast %cst_20 : f32 to vector<3x3xf32>
      %33 = arith.select %31, %26, %32 : vector<3x3xi1>, vector<3x3xf32>
      %cst_21 = arith.constant dense<0xFF800000> : vector<3xf32>
      %34 = vector.multi_reduction <maximumf>, %33, %cst_21 [1] : vector<3x3xf32> to vector<3xf32>
      %35 = vector.shape_cast %34 : vector<3xf32> to vector<3x1xf32>
      %36 = vector.broadcast %35 : vector<3x1xf32> to vector<3x3xf32>
      %37 = arith.subf %33, %36 : vector<3x3xf32>
      %38 = math.exp %37 : vector<3x3xf32>
      %cst_22 = arith.constant dense<0.000000e+00> : vector<3xf32>
      %39 = vector.multi_reduction <add>, %38, %cst_22 [1] : vector<3x3xf32> to vector<3xf32>
      %40 = vector.shape_cast %39 : vector<3xf32> to vector<3x1xf32>
      %41 = tpu.reciprocal %40 {approx = true} : vector<3x1xf32> -> vector<3x1xf32>
      %42 = vector.broadcast %41 : vector<3x1xf32> to vector<3x3xf32>
      %43 = arith.mulf %38, %42 : vector<3x3xf32>
      %c0_23 = arith.constant 0 : index
      %c0_24 = arith.constant 0 : index
      %44 = vector.load %arg13[%c0_23, %c0_24] : memref<3x3xf32, #tpu.memory_space<vmem>>, vector<3x3xf32>
      tpu.vector_store %arg13[%c0_23, %c0_24], %43 {strides = array<i32>} : memref<3x3xf32, #tpu.memory_space<vmem>>, vector<3x3xf32>,
      %c0_25 = arith.constant 0 : index
      %c0_26 = arith.constant 0 : index
      %c0_27 = arith.constant 0 : index
      %45 = vector.load %arg11[%c0_25, %c0_26, %c0_27] : memref<1x3x3xf32, #tpu.memory_space<vmem>>, vector<1x3x3xf32>
      %46 = vector.shape_cast %45 : vector<1x3x3xf32> to vector<3x3xf32>
      %47 = vector.shape_cast %43 : vector<3x3xf32> to vector<1x3x3xf32>
      tpu.vector_store %arg11[%c0_25, %c0_26, %c0_27], %47 {strides = array<i32>} : memref<1x3x3xf32, #tpu.memory_space<vmem>>, vector<1x3x3xf32>,
    } else {
    }
    %c1_i32_8 = arith.constant 1 : i32
    %15 = arith.cmpi eq, %arg1, %c1_i32_8 : i32
    %16 = arith.extui %15 : i1 to i32
    %c0_i32_9 = arith.constant 0 : i32
    %17 = arith.cmpi ne, %16, %c0_i32_9 : i32
    scf.if %17 {
      %c0_10 = arith.constant 0 : index
      %c0_11 = arith.constant 0 : index
      %18 = vector.load %arg13[%c0_10, %c0_11] : memref<3x3xf32, #tpu.memory_space<vmem>>, vector<3x3xf32>
      %cst = arith.constant 0.000000e+00 : f32
      %19 = vector.broadcast %cst : f32 to vector<4x128xf32>
      %20 = vector.extract_strided_slice %18 {offsets = [0, 0], sizes = [1, 1], strides = [1, 1]} : vector<3x3xf32> to vector<1x1xf32>
      %21 = vector.extract_strided_slice %1 {offsets = [0, 0], sizes = [4, 128], strides = [1, 1]} : vector<12x128xf32> to vector<4x128xf32>
      %22 = vector.broadcast %20 : vector<1x1xf32> to vector<4x128xf32>
      %23 = arith.mulf %22, %21 : vector<4x128xf32>
      %24 = arith.addf %19, %23 : vector<4x128xf32>
      %25 = vector.extract_strided_slice %18 {offsets = [0, 1], sizes = [1, 1], strides = [1, 1]} : vector<3x3xf32> to vector<1x1xf32>
      %26 = vector.extract_strided_slice %1 {offsets = [4, 0], sizes = [4, 128], strides = [1, 1]} : vector<12x128xf32> to vector<4x128xf32>
      %27 = vector.broadcast %25 : vector<1x1xf32> to vector<4x128xf32>
      %28 = arith.mulf %27, %26 : vector<4x128xf32>
      %29 = arith.addf %24, %28 : vector<4x128xf32>
      %30 = vector.extract_strided_slice %18 {offsets = [0, 2], sizes = [1, 1], strides = [1, 1]} : vector<3x3xf32> to vector<1x1xf32>
      %31 = vector.extract_strided_slice %1 {offsets = [8, 0], sizes = [4, 128], strides = [1, 1]} : vector<12x128xf32> to vector<4x128xf32>
      %32 = vector.broadcast %30 : vector<1x1xf32> to vector<4x128xf32>
      %33 = arith.mulf %32, %31 : vector<4x128xf32>
      %34 = arith.addf %29, %33 : vector<4x128xf32>
      %c0_12 = arith.constant 0 : index
      %c0_13 = arith.constant 0 : index
      %35 = vector.load %arg8[%c0_12, %c0_13] : memref<4x4xf32, #tpu.memory_space<vmem>>, vector<4x4xf32>
      %cst_14 = arith.constant dense<0.000000e+00> : vector<4x128xf32>
      %36 = tpu.matmul %35, %34, %cst_14 {dimension_numbers = #tpu.dot_dimension_numbers<[1], [0], [0], [1], [0, 0, 1, 1], [], []>} : vector<4x4xf32>, vector<4x128xf32>, vector<4x128xf32> -> vector<4x128xf32>
      %c0_15 = arith.constant 0 : index
      %c0_16 = arith.constant 0 : index
      %37 = vector.load %arg9[%c0_15, %c0_16] : memref<4x1xf32, #tpu.memory_space<vmem>>, vector<4x1xf32>
      %38 = vector.broadcast %37 : vector<4x1xf32> to vector<4x128xf32>
      %39 = arith.addf %36, %38 : vector<4x128xf32>
      %c0_17 = arith.constant 0 : index
      %c0_18 = arith.constant 0 : index
      %c0_19 = arith.constant 0 : index
      %40 = vector.load %arg10[%c0_17, %c0_18, %c0_19] : memref<1x4x128xf32, #tpu.memory_space<vmem>>, vector<1x4x128xf32>
      %41 = vector.shape_cast %40 : vector<1x4x128xf32> to vector<4x128xf32>
      %42 = vector.shape_cast %39 : vector<4x128xf32> to vector<1x4x128xf32>
      tpu.vector_store %arg10[%c0_17, %c0_18, %c0_19], %42 {strides = array<i32>} : memref<1x4x128xf32, #tpu.memory_space<vmem>>, vector<1x4x128xf32>,
    } else {
    }
    return
  }
  func.func @transform_0(%arg0: i32, %arg1: i32, %arg2: i32, %arg3: memref<2xi32, #tpu.memory_space<smem>>) -> (i32, i32, i32) {
    %c0_i32 = arith.constant 0 : i32
    %c0_i32_0 = arith.constant 0 : i32
    return %arg0, %c0_i32, %arg2 : i32, i32, i32
  }
  func.func @transform_1(%arg0: i32, %arg1: i32, %arg2: i32, %arg3: memref<2xi32, #tpu.memory_space<smem>>) -> (i32, i32) {
    %c0_i32 = arith.constant 0 : i32
    %c0_i32_0 = arith.constant 0 : i32
    %c0_i32_1 = arith.constant 0 : i32
    return %c0_i32, %c0_i32_0 : i32, i32
  }
  func.func @transform_2(%arg0: i32, %arg1: i32, %arg2: i32, %arg3: memref<2xi32, #tpu.memory_space<smem>>) -> (i32, i32) {
    %c0_i32 = arith.constant 0 : i32
    %c0_i32_0 = arith.constant 0 : i32
    %c0_i32_1 = arith.constant 0 : i32
    return %c0_i32, %c0_i32_0 : i32, i32
  }
  func.func @transform_3(%arg0: i32, %arg1: i32, %arg2: i32, %arg3: memref<2xi32, #tpu.memory_space<smem>>) -> (i32, i32) {
    %c0_i32 = arith.constant 0 : i32
    %c0_i32_0 = arith.constant 0 : i32
    %c0_i32_1 = arith.constant 0 : i32
    return %c0_i32, %c0_i32_0 : i32, i32
  }
  func.func @transform_4(%arg0: i32, %arg1: i32, %arg2: i32, %arg3: memref<2xi32, #tpu.memory_space<smem>>) -> (i32, i32) {
    %c0_i32 = arith.constant 0 : i32
    %c0_i32_0 = arith.constant 0 : i32
    %c0_i32_1 = arith.constant 0 : i32
    return %c0_i32, %c0_i32_0 : i32, i32
  }
  func.func @transform_5(%arg0: i32, %arg1: i32, %arg2: i32, %arg3: memref<2xi32, #tpu.memory_space<smem>>) -> (i32, i32) {
    %c0_i32 = arith.constant 0 : i32
    %c0_i32_0 = arith.constant 0 : i32
    %c0_i32_1 = arith.constant 0 : i32
    return %c0_i32, %c0_i32_0 : i32, i32
  }
  func.func @transform_6(%arg0: i32, %arg1: i32, %arg2: i32, %arg3: memref<2xi32, #tpu.memory_space<smem>>) -> (i32, i32, i32) {
    %0 = arith.muli %arg1, %arg2 : i32
    %c0_i32 = arith.constant 0 : i32
    %c0_i32_0 = arith.constant 0 : i32
    return %arg0, %c0_i32, %0 : i32, i32, i32
  }
  func.func @transform_7(%arg0: i32, %arg1: i32, %arg2: i32, %arg3: memref<2xi32, #tpu.memory_space<smem>>) -> (i32, i32, i32) {
    %c0_i32 = arith.constant 0 : i32
    %c0_i32_0 = arith.constant 0 : i32
    %c0_i32_1 = arith.constant 0 : i32
    return %arg0, %c0_i32, %c0_i32_0 : i32, i32, i32
  }
}

</mosaic_0001>

<bundles_post_ra>
// kernel: tpu_custom_call.1
= control target key start
LH: loop header
LB: loop body
LE: loop exit
PB: predicated region body
PF: predicated region fallthrough
CT: control target
= control target key end

     0   :  { %s1572_s0 = inlined_call_operand.vmem [shape: s32[2], index: 0, kind: input, shape index: {}]   ;;  %s1573_s1 = inlined_call_operand.vmem [shape: f32[2,12,256], index: 1, kind: input, shape index: {}]   ;;  %s1574_s2 = inlined_call_operand.vmem [shape: f32[12,12], index: 2, kind: input, shape index: {}]   ;;  %s1575_s3 = inlined_call_operand.vmem [shape: f32[12,3], index: 3, kind: input, shape index: {}]   ;;  %s1576_s4 = inlined_call_operand.vmem [shape: f32[3,12], index: 4, kind: input, shape index: {}]   ;;  %s1577_s5 = inlined_call_operand.vmem [shape: f32[4,4], index: 5, kind: input, shape index: {}]   ;;  %s1578_s6 = inlined_call_operand.vmem [shape: f32[4,1], index: 6, kind: input, shape index: {}]   ;;  %s1579_s7 = inlined_call_operand.hbm [shape: f32[2,4,256], index: 7, kind: output, shape index: {0}]   ;;  %s1580_s8 = inlined_call_operand.vmem [shape: f32[2,3,3], index: 8, kind: output, shape index: {1}]  }
   0x1   :  { %1585 = sst [smem:[#allocation13_spill]] %s1573_s1  ;;  %s14_s29 = sshll.u32 %s1572_s0, 4  ;;  %s15_s29 = int_to_ptr.vmem [resolvable:$true] %s14_s29 }
   0x2   :  { %1586 = sst [smem:[#allocation14_spill]] %s1574_s2  ;;  %s1107_s30 = scalar_lea.vmem %s15_s29, 16 }
   0x3   :  { %1587 = sst [smem:[#allocation15_spill]] %s1575_s3  ;;  %p1108_p0 = scmp.ne.s32.totalorder %s15_s29, %s1107_s30 }
   0x4   :  { %1588 = sst [smem:[#allocation16_spill]] %s1576_s4  ;;  %p1112_p1 = scmp.lt.s32.totalorder %s15_s29, %s15_s29 }
   0x5   :  { %1589 = sst [smem:[#allocation17_spill]] %s1577_s5  ;;  %p1113_p2 = scmp.lt.s32.totalorder %s1107_s30, %s1107_s30 }
   0x6   :  { %1590 = sst [smem:[#allocation18_spill]] %s1578_s6 }
   0x7   :  { %1591 = sst [smem:[#allocation19_spill]] %s1579_s7  ;;  %p1114_p3 = por %p1113_p2, %p1112_p1 }
   0x9   :  { %p1115_p4 = pnand %p1114_p3, %p1108_p0 }
   0xb   :  { %1118 = shalt.err (!%p1115_p4)  }
   0xc   :  { %s1249_s9 = smov [#allocation5]  }
   0xd   :  { %17 = dma.vmem_to_smem %s15_s29, 16, %s1249_s9, [#allocation4] }
   0xe   :  { %1195 = dma.done.wait [#allocation4], 16 }
   0xf   :  { %1196 = vsyncadd [#allocation4], 4294967280 }
  0x10   :  { %19 = sfence }
  0x11   :  { %20 = vsyncpa [#allocation8], 0 }
  0x12   :  { %22 = vsyncpa [#allocation8 + $0x1], 0  ;;  %s1309_s10 = smov 0   ;;  %s1311_s11 = smov 0  }
  0x13   :  { %s1313_s0 = smov 0   ;;  %s1315_s12 = smov 0  }
  0x14   :  { %s1317_s13 = smov 0   ;;  %s1319_s14 = smov 0  }
  0x15   :  { %s1321_s15 = smov 0   ;;  %s1323_s16 = smov 0  }
  0x16   :  { %s1325_s17 = smov 0   ;;  %s1327_s18 = smov 0  }
  0x17   :  { %s1329_s19 = smov 0   ;;  %s1331_s20 = smov 0  }
  0x18 LB: > { %1592 = sst [smem:[#allocation11_spill]] %s1239_s18  ;;  %s903_s21 = sadd.s32 4294967295, %s1247_s20   ;;  %s1247_s20 = sphi %s1331_s20, %s28_s20   ;;  %s1243_s19 = sphi %s1329_s19, %s1617_s19   ;;  %s1239_s18 = sphi %s1327_s18, %s1608_s18   ;;  %s1235_s17 = sphi %s1325_s17, %s1616_s17   ;;  %s1231_s16 = sphi %s1323_s16, %s1615_s16   ;;  %s1227_s15 = sphi %s1321_s15, %s1607_s15   ;;  %s1223_s14 = sphi %s1319_s14, %s1614_s14   ;;  %s1219_s13 = sphi %s1317_s13, %s1613_s13   ;;  %s1215_s12 = sphi %s1315_s12, %s1612_s12   ;;  %s1211_s0 = sphi %s1313_s0, %s1611_s0   ;;  %s1207_s11 = sphi %s1311_s11, %s1610_s11   ;;  %s1203_s10 = sphi %s1309_s10, %s1609_s10  }
  0x19   : > { %s904_s22 = sadd.s32 4294967294, %s1247_s20   ;;  %s40_s23 = sadd.s32 1, %s1235_s17 }
  0x1a   : > { %p41_p5 = scmp.ge.s32.totalorder %s40_s23, 2  ;;  %s43_s24 = sadd.s32 1, %s1239_s18 }
  0x1b   : > { %s47_s25 = sadd.s32 1, %s1243_s19  ;;  %p63_p6 = scmp.ne.s32.totalorder %s1219_s13, %s1215_s12 }
  0x1c   : > { %s1619_s23 = smov (%p41_p5, %s40_s23), 0  ;;  %s1621_s24 = smov (!%p41_p5, %s43_s24), %s1239_s18 }
  0x1d   : > { %s56_s26 = sadd.s32 1, %s1219_s13  ;;  %p64_p7 = scmp.eq.s32.totalorder %s1247_s20, 0 }
  0x1e   : > { %p45_p8 = scmp.ge.s32.totalorder %s1621_s24, 2  ;;  %s52_s27 = ssub.s32 %s1235_s17, %s1619_s23 }
  0x1f   : > { %p1383_p9 = por %p64_p7, %p63_p6  ;;  %s184_s29 = smul.u32 %s1235_s17, %s1239_s18 }
  0x20   : > { %s1623_s24 = smov (%p45_p8, %s1621_s24), 0  ;;  %s1625_s25 = smov (!%p45_p8, %s47_s25), %s1243_s19 }
  0x21   : > { %1594 = sst [smem:[#allocation12_spill]] %s1623_s24  ;;  %s185_s30 = smul.u32 %s1623_s24, %s1619_s23 }
  0x22   : > { %p201_p10 = scmp.ne.s32.totalorder %s1211_s0, %s1207_s11  ;;  %p49_p11 = scmp.ge.s32.totalorder %s1625_s25, 2 }
  0x23   : > { %p202_p12 = scmp.eq.s32.totalorder %s903_s21, 7  ;;  %s187_s9 = ssub.s32 %s184_s29, %s185_s30 }
  0x24   : > { %p207_p13 = scmp.ne.s32.totalorder %s1207_s11, %s1203_s10  ;;  %s1627_s25 = smov (%p49_p11, %s1625_s25), 0 }
  0x25   : > { %p1400_p0 = por %p202_p12, %p201_p10  ;;  %p208_p1 = scmp.eq.s32.totalorder %s904_s22, 7 }
  0x26   : > { %s51_s18 = ssub.s32 %s1243_s19, %s1627_s25  ;;  %s191_s5 = sadd.s32 1, %s1211_s0 }
  0x27   : > { %s53_s6 = sor.u32 %s52_s27, %s51_s18  ;;  %s188_s4 = sor.u32 %s187_s9, %s51_s18 }
  0x28   : > { %p54_p2 = scmp.eq.s32.totalorder %s53_s6, 0  ;;  %p189_p3 = scmp.eq.s32.totalorder %s188_s4, 0 }
  0x29   : > { %p1407_p4 = por %p208_p1, %p207_p13  ;;  %p906_p5 = scmp.ge.s32.totalorder %s1247_s20, 8 }
  0x2a   : > { %s1412_s21 = scalar_select %p54_p2, %s1219_s13, %s56_s26  }
  0x2b   : > { %s1415_s29 = scalar_select %p189_p3, %s1211_s0, %s191_s5  }
  0x2c   : > { %265 = sbr.rel (%p906_p5) target bundleno = 62 (0x3e), region = 36 }
  0x33   : > { %268 = sbr.rel (!%p1383_p9) target bundleno = 62 (0x3e), region = 40  ;;  %s270_s18 = sand.u32 (%p1383_p9), 1, %s1219_s13  }
  0x34   : > { %s908_s6 = sshll.u32 (%p1383_p9), %s1243_s19, 2  ;;  %s907_s4 = sshll.u32 (%p1383_p9), %s270_s18, 4 }
  0x35   : > { %s274_s22 = sadd.s32 (%p1383_p9), %s1235_s17, %s908_s6  ;;  %s1597_s1 = sld [smem:[#allocation13_spill]] (%p1383_p9) }
  0x36   : > { %s909_s27 = sshll.u32 (%p1383_p9), %s274_s22, 3  ;;  %s272_s5 = scalar_lea.vmem (%p1383_p9), [#allocation6], %s907_s4 }
  0x3b   : > { %s276_s26 = scalar_lea.vmem %s1597_s1, %s909_s27 }
  0x3c   : > { %v306_v0 = vld [vmem:[%s276_s26] sm:$0xff]  ;;  %v308_v1 = vld [vmem:[%s276_s26 + $0x10] sm:$0xff] }
  0x3d   : > { %307 = vst [vmem:[%s272_s5] sm:$0xff] %v306_v0  ;;  %309 = vst [vmem:[%s272_s5 + $0x8] sm:$0xff] %v308_v1 }
  0x3e PF: > { %p910_p6 = scmp.ge.s32.totalorder %s1247_s20, 1  ;;  %p314_p7 = scmp.lt.s32.totalorder %s1247_s20, 9 }
  0x40   : > { %p315_p8 = pnand %p910_p6, %p314_p7 }
  0x41   : > { %s321_s28 = sand.u32 (!%p315_p8), 1, %s1215_s12   ;;  %s1584_s18 = sand.u32 (!%p315_p8), 1, %s1207_s11  }
  0x42   : > { %318 = sbr.rel (%p315_p8) target bundleno = 1496 (0x5d8), region = 78  ;;  %s911_s6 = sshll.u32 (!%p315_p8), %s321_s28, 4 }
  0x43   : > { %s1432_s4 = sshll.u32 (!%p315_p8), %s1584_s18, 2  ;;  %p357_p9 = scmp.lt.s32.totalorder (!%p315_p8), %s1231_s16, 1 }
  0x44   : > { %s323_s22 = scalar_lea.vmem (!%p315_p8), [#allocation6], %s911_s6  ;;  %p363_p10 = scmp.eq.s32.totalorder (!%p315_p8), %s1227_s15, 0 }
  0x45   : > { %v1435_v2 = vld [vmem:[%s323_s22] sm:$0xff] (!%p315_p8)  ;;  %v1437_v3 = vld [vmem:[%s323_s22 + $0x8] sm:$0xf] (!%p315_p8)  ;;  %p364_p11 = scmp.eq.s32.totalorder (!%p315_p8), %s1223_s14, 0  ;;  %s349_s5 = scalar_lea.vmem (!%p315_p8), [#allocation7], %s1432_s4 }
  0x47   : > { %p365_p12 = pnand (!%p315_p8), %p364_p11, %p363_p10 }
  0x49   : > { %s358_s27 = scalar_select %p357_p9, %s1231_s16, 1 }
  0x4a   : > { %368 = sbr.rel (%p365_p12) target bundleno = 81 (0x51), region = 86  ;;  %vm369_vm0 = vcmask (!%p365_p12), 97280   ;;  %vm371_vm1 = vcmask (!%p365_p12), 93184   ;;  %v1250_v4 = vmov (!%p365_p12), 0.0  }
  0x4b   : > { %s913_s30 = sshll.u32 %s358_s27, 2  ;;  %370 = vst.msk [vmem:[#allocation2] sm:$0xff] (!%p365_p12), %vm369_vm0, %v1250_v4 }
  0x4c   : > { %s1447_s26 = scalar_lea.vmem %s1580_s8, %s913_s30  ;;  %372 = vst.msk [vmem:[#allocation2 + $0x8] sm:$0xf] (!%p365_p12), %vm371_vm1, %v1250_v4 }
  0x51 PF: > { %p914_p13 = scmp.ne.s32.totalorder %s1227_s15, 0 }
  0x52   : > { %v967_v5 = vpack.c.bf16 (!%p914_p13), %v1437_v3, %v1435_v2  ;;  %945 = vmatprep.mubr.f32.mxu0 (!%p914_p13), %v1435_v2  ;;  %v376_v7 = vld [vmem:[#allocation2] sm:$0xff] (!%p914_p13)  ;;  %vm457_vm2 = vcmask (!%p914_p13), 93184   ;;  %vm455_vm3 = vcmask (!%p914_p13), 97280  }
  0x53   : > { %375 = sbr.rel (%p914_p13) target bundleno = 308 (0x134), region = 90  ;;  %v377_v6 = vld [vmem:[#allocation2 + $0x8] sm:$0xf] (!%p914_p13) }
  0x54   : > { %968 = vmatprep.subr.bf16.mxu0 (!%p914_p13), %v967_v5 }
  0x55   : > { %970 = vmatpush3.bf16.xpose.msra.mxu0 (!%p914_p13), %v967_v5 }
  0x5c   : > { %946 = vmatmul.mubr.f32.vlgmr.msra.gmra.mrb[0].mxu0 %v1437_v3 }
 0x12f   : > { %v947_v8 = vpop.f32.mrb[0].mxu0 }
 0x130   : > { %v454_v9 = vadd.f32 %v947_v8, %v377_v6  ;;  %v444_v10 = vpop.f32.mrb[1].mxu0 }
 0x131   : > { %v453_v11 = vadd.f32 %v444_v10, %v376_v7 }
 0x132   : > { %458 = vst.msk [vmem:[#allocation2 + $0x8] sm:$0xf] %vm457_vm2, %v454_v9 }
 0x133   : > { %456 = vst.msk [vmem:[#allocation2] sm:$0xff] %vm455_vm3, %v453_v11 }
 0x134 PF: > { %p459_p1 = scmp.eq.s32.totalorder %s1227_s15, 1 }
 0x136   : > { %p460_p2 = pnand %p459_p1, %p364_p11 }
 0x137   : > { %s1598_s3 = sld [smem:[#allocation15_spill]] (!%p460_p2)  ;;  %vm479_vm4 = vcmask (!%p460_p2), 1043456   ;;  %vm1251_vm5 = vmmov (!%p460_p2), 1   ;;  %s1601_s2 = sld [smem:[#allocation14_spill]] (!%p460_p2)  ;;  %vm472_vm7 = vcmask (!%p460_p2), 97280   ;;  %v1252_v22 = vmov (!%p460_p2), 0.0|0.0  }
 0x138   : > { %463 = sbr.rel (%p460_p2) target bundleno = 1072 (0x430), region = 94  ;;  %vm1464_vm6 = vmpackc.low (!%p460_p2), %vm479_vm4, %vm1251_vm5  ;;  %977 = vmatprep.subr.bf16.mxu1 (!%p460_p2), %v1252_v22  ;;  %vm1253_vm8 = vmmov (!%p460_p2), 0   ;;  %v1254_v23 = vmov (!%p460_p2), 0.0   ;;  %s1602_s27 = sld [smem:[#allocation16_spill]] (!%p460_p2)  ;;  %v636_v28 = vlaneseq (!%p460_p2)  ;;  %vm642_vm10 = vcmask (!%p460_p2), 18432  }
 0x139   : > { %v465_v18 = vld [vmem:[#allocation2 + $0x8] sm:$0xf] (!%p460_p2)  ;;  %959 = vmatprep.mubr.msk.f32.mxu1 (!%p460_p2), %vm1253_vm8, %v1254_v23  ;;  %s638_s30 = sld [smem:[#allocation5 + %s1231_s16]] (!%p460_p2) }
 0x13a   : > { %v464_v14 = vld [vmem:[#allocation2] sm:$0xff] (!%p460_p2)  ;;  %v637_v29 = vand.u32 (!%p460_p2), 127, %v636_v28 }
 0x13d   : > { %v470_v12 = vld [vmem:[%s1598_s3] sm:$0xff] (!%p460_p2)  ;;  %v471_v13 = vld [vmem:[%s1598_s3 + $0x8] sm:$0xf] (!%p460_p2) }
 0x13e   : > { %v971_v15 = vpack.c.bf16 (!%p460_p2), %v471_v13, %v470_v12  ;;  %v466_v17 = vld [vmem:[%s1601_s2] sm:$0xff] (!%p460_p2)  ;;  %v467_v20 = vld [vmem:[%s1601_s2 + $0x8] sm:$0xf] (!%p460_p2) }
 0x13f   : > { %v468_v19 = vmul.f32 %v466_v17, %v464_v14  ;;  %v469_v21 = vmul.f32 %v467_v20, %v465_v18  ;;  %v558_v27 = vld [vmem:[%s1602_s27] sm:$0x7]  ;;  %v639_v30 = vstv %s638_s30 }
 0x140   : > { %973 = vmatprep.subr.msk.bf16.mxu0 %vm1464_vm6, %v971_v15  ;;  %vm640_vm9 = vcmp.lt.s32.totalorder %v637_v29, %v639_v30 }
 0x141   : > { %976 = vmatpush3.bf16.msk.msra.mxu0 %vm1464_vm6, %v971_v15  ;;  %952 = vmatprep.mubr.msk.f32.mxu0 %vm472_vm7, %v468_v19 }
 0x144   : > { %953 = vmatmul.mubr.msk.f32.vlgmr.msra.gmra.mrb[0].mxu0 %vm472_vm7, %v469_v21 }
 0x217   : > { %v954_v24 = vpop.f32.mrb[0].mxu0 }
 0x218   : > { %v549_v25 = vpop.f32.mrb[1].mxu0 }
 0x219   : > { %v978_v26 = vpack.c.bf16 %v954_v24, %v549_v25 }
 0x21b   : > { %980 = vmatpush3.bf16.msk.msra.mxu1 %vm1464_vm6, %v978_v26 }
 0x21e   : > { %960 = vmatmul.mubr.msk.f32.vlgmr.msra.gmra.mrb[0].mxu1 %vm472_vm7, %v558_v27 }
 0x2f1   : > { %v631_v31 = vpop.f32.mrb[0].mxu1 }
 0x2f2   : > { %v635_v32 = vmul.f32 0.70710677, %v631_v31  ;;  %v961_v33 = vpop.f32.mrb[1].mxu1 }
 0x2f4   : > { %v641_v34 = vsel %vm640_vm9, %v635_v32, -1e+30 }
 0x2f5   : > { %v643_v35 = vsel %vm642_vm10, %v641_v34, -inf }
 0x2f6   : > { %644 = vmax.xlane.f32.xlu0 %v643_v35 }
 0x383   : > { %v645_v36 = vpop.xlane.xlu0 %644 }
 0x384   : > { %v646_v37 = vsub.f32 %v641_v34, %v645_v36 }
 0x386   : > { %v647_v38 = vmul.f32 1.442695, %v646_v37 }
 0x388   : > { %1101 = vpow2.f32 %v647_v38 }
 0x392   : > { %v1102_v39 = vpop.eup %1101 }
 0x393   : > { %v649_v40 = vsel %vm642_vm10, %v1102_v39, 0.0 }
 0x394   : > { %650 = vadd.xlane.f32.xlu0 %v649_v40 }
 0x421   : > { %v651_v41 = vpop.xlane.xlu0 %650 }
 0x422   : > { %1103 = vrcp.f32 %v651_v41 }
 0x42c   : > { %v1104_v42 = vpop.eup %1103 }
 0x42d   : > { %v653_v43 = vmul.f32 %v1104_v42, %v1102_v39 }
 0x42f   : > { %654 = vst.msk [vmem:[#allocation3] sm:$0x7] %vm642_vm10, %v653_v43  ;;  %655 = vst.msk [vmem:[%s1447_s26] sm:$0x7] %vm642_vm10, %v653_v43 }
 0x430 PF: > { %p920_p3 = scmp.ne.s32.totalorder %s1227_s15, 1 }
 0x431   : > { %s1255_s9 = smov (!%p920_p3), 127   ;;  %s1256_s12 = smov (!%p920_p3), 126   ;;  %v1257_v45 = vmov (!%p920_p3), 0.0   ;;  %vm1258_vm11 = vmmov (!%p920_p3), 0   ;;  %v1259_v47 = vmov (!%p920_p3), 0   ;;  %vm694_vm12 = vcmask (!%p920_p3), 1043456  }
 0x432   : > { %658 = sbr.rel (%p920_p3) target bundleno = 1469 (0x5bd), region = 98  ;;  %962 = vmatprep.subr.mxu0 (!%p920_p3), %v1257_v45  ;;  %964 = vmatprep.mubr.msk.f32.mxu0 (!%p920_p3), %vm1258_vm11, %v1257_v45  ;;  %s1603_s22 = sld [smem:[#allocation18_spill]] (!%p920_p3)  ;;  %vm690_vm13 = vcmask (!%p920_p3), 31744  }
 0x433   : > { %1105 = vset.pattern.permute.xlu1 (!%p920_p3), %v1259_v47  ;;  %1106 = vset.pattern.permute.xlu0 (!%p920_p3), %v1259_v47  ;;  %s1604_s28 = sld [smem:[#allocation17_spill]] (!%p920_p3) }
 0x436   : > { %v659_v44 = vld [vmem:[#allocation3] sm:$0x7] (!%p920_p3) }
 0x437   : > { %666 = vrot.lane.b32.xlu0 (!%p920_p3), %v659_v44, %s1255_s9  ;;  %981 = vpush (!%p920_p3), %v659_v44 }
 0x438   : > { %v684_v46 = vld [vmem:[%s1603_s22] sm:$0xf] (!%p920_p3) }
 0x439   : > { %687 = vperm.xlu1 %1105, %v684_v46   ;;  %v683_v59 = vld [vmem:[%s1604_s28] sm:$0xf] }
 0x43b   : > { %676 = vrot.lane.b32.xlu0 %v659_v44, %s1256_s12 }
 0x468   : > { %s982_s26 = spop %981 }
 0x469   : > { %v662_v50 = vstv %s982_s26 }
 0x46a   : > { %v664_v53 = vmul.f32 %v662_v50, %v1435_v2 }
 0x4a9   : > { %v667_v48 = vpop.permute.xlu0 %666 }
 0x4aa   : > { %983 = vpush %v667_v48 }
 0x4ad   : > { %v677_v49 = vpop.permute.xlu0 %676 }
 0x4ae   : > { %985 = vpush %v677_v49 }
 0x4b8   : > { %v688_v60 = vpop.permute.xlu1 %687 }
 0x4db   : > { %s984_s27 = spop %983 }
 0x4dc   : > { %v669_v51 = vstv %s984_s27 }
 0x4dd   : > { %v671_v52 = vmul.f32 %v669_v51, %v1435_v2 }
 0x4df   : > { %v673_v54 = vrot.slane %v671_v52, 4  ;;  %s986_s30 = spop %985 }
 0x4e0   : > { %v679_v55 = vstv %s986_s30 }
 0x4e1   : > { %v675_v56 = vadd.f32 %v673_v54, %v664_v53  ;;  %v681_v57 = vmul.f32 %v679_v55, %v1437_v3 }
 0x4e3   : > { %v682_v58 = vadd.f32 %v681_v57, %v675_v56 }
 0x4e5   : > { %963 = vmatpush3.msk.msra.mxu0 %vm694_vm12, %v682_v58 }
 0x4e6   : > { %965 = vmatmul.mubr.msk.f32.vlgmr.msra.gmra.mrb[0].mxu0 %vm690_vm13, %v683_v59 }
 0x5b9   : > { %v764_v61 = vpop.f32.mrb[0].mxu0 }
 0x5ba   : > { %v765_v62 = vadd.f32 %v764_v61, %v688_v60  ;;  %v966_v63 = vpop.f32.mrb[1].mxu0 }
 0x5bc   : > { %768 = vst [vmem:[%s349_s5] sm:$0xf] %v765_v62 }
 0x5bd PF: > { %s781_s6 = smul.u32 %s1223_s14, %s1227_s15  ;;  %s924_s22 = sshll.u32 %s1231_s16, 1 }
 0x5be   : > { %s790_s26 = sshll.u32 %s349_s5, 4  ;;  %s1605_s28 = sld [smem:[#allocation19_spill]]  ;;  %s1509_s26 = int_to_ptr.vmem [resolvable:$true] %s790_s26 }
 0x5bf   : > { %s786_s27 = sadd.s32 %s924_s22, %s781_s6  ;;  %s1606_s1 = sand.u32 1, %s1207_s11  }
 0x5c0   : > { %s925_s30 = sshll.u32 %s786_s27, 6  ;;  %s770_s2 = scalar_lea.sflag [#allocation8], %s1606_s1 }
 0x5c1   : > { %s1119_s3 = scalar_lea.vmem %s1509_s26, 64  ;;  %s1260_s14 = smov [#allocation7]  }
 0x5c2   : > { %p1120_p5 = scmp.ne.s32.totalorder %s1509_s26, %s1119_s3  ;;  %s1123_s15 = sshll.u32 %s1260_s14, 4  ;;  %s1124_s15 = int_to_ptr.vmem [resolvable:$false] %s1123_s15 }
 0x5c3   : > { %s1125_s16 = scalar_lea.vmem %s1124_s15, 128  ;;  %p1126_p8 = scmp.lt.s32.totalorder %s1509_s26, %s1124_s15 }
 0x5c4   : > { %s788_s18 = scalar_lea.hbm %s1605_s28, %s925_s30  ;;  %p1121_p6 = pnand %p1120_p5, %p1400_p0 }
 0x5c5   : > { %p1127_p9 = scmp.lt.s32.totalorder %s1125_s16, %s1119_s3 }
 0x5c6   : > { %p1122_p7 = pneg %p1121_p6 }
 0x5c7   : > { %p1128_p10 = por %p1127_p9, %p1126_p8 }
 0x5c9   : > { %p1129_p11 = pnand %p1128_p10, %p1122_p7 }
 0x5cb   : > { %1132 = shalt.err (!%p1129_p11)
}
 0x5cc   : > { %s1133_s4 = scalar_lea.hbm %s788_s18, 64  ;;  %s1137_s6 = scalar_lea.hbm %s1605_s28, 256 }
 0x5cd   : > { %p1134_p12 = scmp.ne.s32.totalorder %s788_s18, %s1133_s4  ;;  %p1138_p2 = scmp.lt.u32.totalorder %s788_s18, %s1605_s28 }
 0x5ce   : > { %p1139_p3 = scmp.lt.u32.totalorder %s1137_s6, %s1133_s4  ;;  %p1141_p6 = scmp.lt.u32.totalorder %s1133_s4, %s788_s18 }
 0x5cf   : > { %p1135_p13 = pnand %p1134_p12, %p1400_p0 }
 0x5d0   : > { %p1140_p5 = por %p1139_p3, %p1138_p2 }
 0x5d1   : > { %p1136_p1 = pneg %p1135_p13 }
 0x5d2   : > { %p1142_p8 = por %p1141_p6, %p1140_p5 }
 0x5d4   : > { %p1143_p7 = pnand %p1142_p8, %p1136_p1 }
 0x5d6   : > { %1146 = shalt.err (!%p1143_p7)
}
 0x5d7   : > { %987 = dma.vmem_to_hbm [thread:$0]  (%p1400_p0), %s1509_s26, 64, %s788_s18, %s770_s2  }
 0x5d8 PF: > { %p993_p9 = scmp.ge.s32.totalorder %s1247_s20, 2  ;;  %s805_s3 = sand.u32 1, %s1203_s10  }
 0x5d9   : > { %s806_s30 = scalar_lea.sflag [#allocation8], %s805_s3 }
 0x5da   : > { %p990_p10 = pnand %p993_p9, %p1407_p4 }
 0x5dc   : > { %1198 = dma.done.wait (!%p990_p10), %s806_s30, 64  }
 0x5dd   : > { %1200 = vsyncadd (!%p990_p10), %s806_s30, 4294967232  ;;  %s28_s20 = sadd.s32 1, %s1247_s20   ;;  %s1607_s15 = sld [smem:[#allocation11_spill]] }
 0x5de   : > { %p25_p11 = scmp.ge.s32.totalorder %s28_s20, 10   ;;  %s1608_s18 = sld [smem:[#allocation12_spill]] }
 0x5df   : > { %s1609_s10 = smov %s1207_s11  ;;  %s1610_s11 = smov %s1211_s0 }
 0x5e0   : > { %s1611_s0 = smov %s1415_s29  ;;  %s1612_s12 = smov %s1219_s13 }
 0x5e1   : > { %s1613_s13 = smov %s1412_s21  ;;  %s1614_s14 = smov %s1235_s17 }
 0x5e2   : > { %s1615_s16 = smov %s1243_s19  ;;  %s1616_s17 = smov %s1619_s23 }
 0x5e3   : > { %s1617_s19 = smov %s1627_s25  ;;  %27 = sbr.rel (!%p25_p11) target bundleno = 24 (0x18), region = 150 }
 0x5ea   :  { %818 = vsyncpa [#allocation8], 1 }
 0x5eb   :  { %820 = vsyncpa [#allocation8 + $0x1], 1 }

</bundles_post_ra>
